<compile_context>
chip_gen: v6e
topology: v6e:2x2x1
jax: 0.10.0
libtpu: 0.0.40
codegen_flags: <defaults>
</compile_context>

<pallas_src>
import functools

import jax
import jax.numpy as jnp
from jax import lax
from jax.experimental import pallas as pl
from jax.experimental.pallas import tpu as pltpu

_LANE = 128


def _cdiv(a, b):
    return -(-a // b)


def _round_up(a, b):
    return _cdiv(a, b) * b


def _charbonnier_kernel(x_ref, y_ref, out_ref, acc_ref, *, eps, d, tk, mask_last):
    # x_ref / y_ref: (bn, tk) storage-dtype tiles; acc_ref: (bn, tk) f32 scratch;
    # out_ref: (bn, 1) per-sample result, written once at the last k step.
    k = pl.program_id(1)

    @pl.when(k == 0)
    def _():
        acc_ref[...] = jnp.zeros_like(acc_ref)

    diff = x_ref[...].astype(jnp.float32) - y_ref[...].astype(jnp.float32)
    if mask_last:
        # Zero lanes past the real feature extent (ragged last reduction tile).
        col = lax.broadcasted_iota(jnp.int32, diff.shape, 1) + k * tk
        diff = jnp.where(col < d, diff, jnp.float32(0.0))
    acc_ref[...] += diff * diff  # pure VPU in the steady state

    @pl.when(k == pl.num_programs(1) - 1)
    def _():
        s = jnp.sum(acc_ref[...], axis=1, keepdims=True)  # single lane reduce
        out_ref[...] = jnp.sqrt(s + jnp.float32(eps))


def charbonnier_loss(x, y, epsilon=0.001):
    """X, Y: (N, C, H, W). Returns mean_n sqrt(sum_chw((X-Y)^2) + eps^2)."""
    assert x.shape == y.shape
    n = int(x.shape[0])
    d = 1
    for s in x.shape[1:]:
        d *= int(s)
    eps = float(epsilon) ** 2

    # Free reshape (contiguous) — no padded copies of the inputs.
    x2 = x.reshape(n, d)
    y2 = y.reshape(n, d)

    itemsize = jnp.dtype(x.dtype).itemsize
    sub = {1: 32, 2: 16, 4: 8}.get(itemsize, 8)   # dtype-aware min sublane tile
    target_block_bytes = 2 << 20                  # ~2 MiB per input block

    # ---- choose (bn, tk) so bn * tk * itemsize ~= target_block_bytes --------
    bn = n if n <= sub else sub                   # sublane-legal sample block
    tk = max(_LANE, (target_block_bytes // (bn * itemsize)) // _LANE * _LANE)
    if tk >= d:
        # Whole feature axis fits in one block: no reduction tiling needed.
        tk = d
        kt = 1
        if n > bn:
            # Grow the sample block toward the byte budget ...
            bn = min(n, max(sub, (target_block_bytes // (d * itemsize)) // sub * sub))
            if bn < n:
                # ... but keep >=2 programs on the parallel axis (v7x: 2 TCs).
                bn = min(bn, _round_up(_cdiv(n, 2), sub))
    else:
        kt = _cdiv(d, tk)
    mask_last = (kt * tk != d)  # ragged last feature tile -> mask OOB lanes
    # TODO(synk): for v7x with very small N and huge D (grid (1, kt)), also split
    # the reduction axis across the two TensorCores and combine partials pre-sqrt.

    grid = (_cdiv(n, bn), kt)
    kernel = functools.partial(
        _charbonnier_kernel, eps=eps, d=d, tk=tk, mask_last=mask_last
    )

    per_sample = pl.pallas_call(
        kernel,
        out_shape=jax.ShapeDtypeStruct((n, 1), jnp.float32),
        grid=grid,
        in_specs=[
            pl.BlockSpec((bn, tk), lambda i, k: (i, k)),
            pl.BlockSpec((bn, tk), lambda i, k: (i, k)),
        ],
        out_specs=pl.BlockSpec((bn, 1), lambda i, k: (i, 0)),
        scratch_shapes=[pltpu.VMEM((bn, tk), jnp.float32)],
        compiler_params=pltpu.CompilerParams(
            dimension_semantics=("parallel", "arbitrary"),
            vmem_limit_bytes=48 * 1024 * 1024,
        ),
        cost_estimate=pl.CostEstimate(
            flops=3 * n * d,
            transcendentals=n,
            bytes_accessed=2 * n * d * itemsize + n * 4,
        ),
    )(x2, y2)

    # Final mean over samples (deferred 1/N), done in the wrapper.
    return jnp.mean(per_sample[:, 0])


def charbonnier_loss_ref(x, y, epsilon=0.001):
    diff = x.astype(jnp.float32) - y.astype(jnp.float32)
    sq_sum = jnp.sum(diff * diff, axis=(1, 2, 3))
    return jnp.mean(jnp.sqrt(sq_sum + epsilon ** 2))


if __name__ == "__main__":
    key = jax.random.PRNGKey(0)
    kx, ky = jax.random.split(key)
    shape = (2, 4, 16, 16)  # N, C, H, W
    x = jax.random.normal(kx, shape, dtype=jnp.float32)
    y = jax.random.normal(ky, shape, dtype=jnp.float32)

    out = jax.block_until_ready(charbonnier_loss(x, y))

    ref = charbonnier_loss_ref(x, y)
    assert jnp.allclose(out, ref, rtol=1e-5, atol=1e-5), (out, ref)
    print("KERNEL_OK")
</pallas_src>

<mosaic_0001>
module attributes {stable_mosaic.version = 11 : i64} {
  func.func @_charbonnier_kernel(%arg0: i32, %arg1: i32, %arg2: memref<2x1024xf32, #tpu.memory_space<vmem>>, %arg3: memref<2x1024xf32, #tpu.memory_space<vmem>>, %arg4: memref<2x1xf32, #tpu.memory_space<vmem>>, %arg5: memref<2x1024xf32, #tpu.memory_space<vmem>>) attributes {dimension_semantics = [#tpu.dimension_semantics<parallel>, #tpu.dimension_semantics<arbitrary>], iteration_bounds = array<i64: 1, 1>, scalar_prefetch = 0 : i64, scratch_operands = 1 : i64, tpu.core_type = #tpu.core_type<tc>, window_params = [{transform_indices = @transform_0, window_bounds = array<i64: 2, 1024>}, {transform_indices = @transform_1, window_bounds = array<i64: 2, 1024>}, {transform_indices = @transform_2, window_bounds = array<i64: 2, 1>}]} {
    %c0_i32 = arith.constant 0 : i32
    %0 = arith.cmpi eq, %arg1, %c0_i32 : i32
    %1 = arith.extui %0 : i1 to i32
    %c0_i32_0 = arith.constant 0 : i32
    %2 = arith.cmpi ne, %1, %c0_i32_0 : i32
    scf.if %2 {
      %cst = arith.constant 0.000000e+00 : f32
      %13 = vector.broadcast %cst : f32 to vector<2x1024xf32>
      %c0_10 = arith.constant 0 : index
      %c0_11 = arith.constant 0 : index
      %14 = vector.load %arg5[%c0_10, %c0_11] : memref<2x1024xf32, #tpu.memory_space<vmem>>, vector<2x1024xf32>
      tpu.vector_store %arg5[%c0_10, %c0_11], %13 {strides = array<i32>} : memref<2x1024xf32, #tpu.memory_space<vmem>>, vector<2x1024xf32>,
    } else {
    }
    %c0 = arith.constant 0 : index
    %c0_1 = arith.constant 0 : index
    %3 = vector.load %arg2[%c0, %c0_1] : memref<2x1024xf32, #tpu.memory_space<vmem>>, vector<2x1024xf32>
    %c0_2 = arith.constant 0 : index
    %c0_3 = arith.constant 0 : index
    %4 = vector.load %arg3[%c0_2, %c0_3] : memref<2x1024xf32, #tpu.memory_space<vmem>>, vector<2x1024xf32>
    %5 = arith.subf %3, %4 : vector<2x1024xf32>
    %c0_4 = arith.constant 0 : index
    %c0_5 = arith.constant 0 : index
    %6 = vector.load %arg5[%c0_4, %c0_5] : memref<2x1024xf32, #tpu.memory_space<vmem>>, vector<2x1024xf32>
    %7 = arith.mulf %5, %5 : vector<2x1024xf32>
    %8 = arith.addf %6, %7 : vector<2x1024xf32>
    %c0_6 = arith.constant 0 : index
    %c0_7 = arith.constant 0 : index
    %9 = vector.load %arg5[%c0_6, %c0_7] : memref<2x1024xf32, #tpu.memory_space<vmem>>, vector<2x1024xf32>
    tpu.vector_store %arg5[%c0_6, %c0_7], %8 {strides = array<i32>} : memref<2x1024xf32, #tpu.memory_space<vmem>>, vector<2x1024xf32>,
    %c0_i32_8 = arith.constant 0 : i32
    %10 = arith.cmpi eq, %arg1, %c0_i32_8 : i32
    %11 = arith.extui %10 : i1 to i32
    %c0_i32_9 = arith.constant 0 : i32
    %12 = arith.cmpi ne, %11, %c0_i32_9 : i32
    scf.if %12 {
      %c0_10 = arith.constant 0 : index
      %c0_11 = arith.constant 0 : index
      %13 = vector.load %arg5[%c0_10, %c0_11] : memref<2x1024xf32, #tpu.memory_space<vmem>>, vector<2x1024xf32>
      %cst = arith.constant dense<0.000000e+00> : vector<2xf32>
      %14 = vector.multi_reduction <add>, %13, %cst [1] : vector<2x1024xf32> to vector<2xf32>
      %15 = vector.shape_cast %14 : vector<2xf32> to vector<2x1xf32>
      %cst_12 = arith.constant 9.99999997E-7 : f32
      %16 = vector.broadcast %cst_12 : f32 to vector<2x1xf32>
      %17 = arith.addf %15, %16 : vector<2x1xf32>
      %18 = math.sqrt %17 : vector<2x1xf32>
      %c0_13 = arith.constant 0 : index
      %c0_14 = arith.constant 0 : index
      %19 = vector.load %arg4[%c0_13, %c0_14] : memref<2x1xf32, #tpu.memory_space<vmem>>, vector<2x1xf32>
      tpu.vector_store %arg4[%c0_13, %c0_14], %18 {strides = array<i32>} : memref<2x1xf32, #tpu.memory_space<vmem>>, vector<2x1xf32>,
    } else {
    }
    return
  }
  func.func @transform_0(%arg0: i32, %arg1: i32) -> (i32, i32) {
    %c0_i32 = arith.constant 0 : i32
    return %arg0, %arg1 : i32, i32
  }
  func.func @transform_1(%arg0: i32, %arg1: i32) -> (i32, i32) {
    %c0_i32 = arith.constant 0 : i32
    return %arg0, %arg1 : i32, i32
  }
  func.func @transform_2(%arg0: i32, %arg1: i32) -> (i32, i32) {
    %c0_i32 = arith.constant 0 : i32
    %c0_i32_0 = arith.constant 0 : i32
    return %arg0, %c0_i32 : i32, i32
  }
}

</mosaic_0001>

<bundles_post_ra>
// kernel: tpu_custom_call.1
= control target key start
LH: loop header
LB: loop body
LE: loop exit
PB: predicated region body
PF: predicated region fallthrough
CT: control target
= control target key end

     0   :  { %7 = vsyncpa [#allocation4], 0  ;;  %s222_s0 = inlined_call_operand.hbm [shape: f32[2,1024], index: 0, kind: input, shape index: {}]   ;;  %s223_s1 = inlined_call_operand.hbm [shape: f32[2,1024], index: 1, kind: input, shape index: {}]   ;;  %s224_s2 = inlined_call_operand.vmem [shape: f32[2,1], index: 2, kind: output, shape index: {}]  }
   0x1   :  { %8 = vsyncpa [#allocation6], 0  ;;  %s187_s9 = smov [#allocation3]   ;;  %s188_s11 = smov [#allocation5]  }
   0x2   :  { %s15_s10 = sshll.u32 %s187_s9, 4  ;;  %s25_s12 = sshll.u32 %s188_s11, 4  ;;  %s16_s10 = int_to_ptr.vmem [resolvable:$true] %s15_s10  ;;  %s26_s12 = int_to_ptr.vmem [resolvable:$true] %s25_s12 }
   0x3   :  { %s151_s13 = scalar_lea.vmem %s16_s10, 256  ;;  %p156_p1 = scmp.lt.s32.totalorder %s16_s10, %s16_s10 }
   0x4   :  { %p152_p0 = scmp.ne.s32.totalorder %s16_s10, %s151_s13  ;;  %p157_p2 = scmp.lt.s32.totalorder %s151_s13, %s151_s13 }
   0x6   :  { %p158_p3 = por %p157_p2, %p156_p1 }
   0x8   :  { %p159_p4 = pnand %p158_p3, %p152_p0 }
   0xa   :  { %162 = shalt.err (!%p159_p4)
}
   0xb   :  { %18 = dma.hbm_to_vmem [thread:$0]  %s222_s0, 256, %s16_s10, [#allocation4]  }
   0xc   :  { %s171_s16 = scalar_lea.vmem %s26_s12, 256  ;;  %p176_p6 = scmp.lt.s32.totalorder %s26_s12, %s26_s12 }
   0xd   :  { %p172_p5 = scmp.ne.s32.totalorder %s26_s12, %s171_s16  ;;  %p177_p7 = scmp.lt.s32.totalorder %s171_s16, %s171_s16 }
   0xf   :  { %p178_p8 = por %p177_p7, %p176_p6 }
  0x11   :  { %p179_p9 = pnand %p178_p8, %p172_p5 }
  0x13   :  { %182 = shalt.err (!%p179_p9)
}
  0x14   :  { %28 = dma.hbm_to_vmem [thread:$0]  %s223_s1, 256, %s26_s12, [#allocation6]  }
  0x15   :  { %183 = dma.done.wait [#allocation4], 256  }
  0x16   :  { %184 = vsyncadd [#allocation4], 4294967040 }
  0x17   :  { %185 = dma.done.wait [#allocation6], 256  }
  0x18   :  { %186 = vsyncadd [#allocation6], 4294967040  ;;  %v66_v0 = vlaneseq  ;;  %v189_v1 = vmov 1983009808   ;;  %v41_v5 = vld [vmem:[#allocation3] sm:$0xff]  ;;  %v42_v6 = vld [vmem:[#allocation3 + $0x8] sm:$0xff] }
  0x19   :  { %v64_v2 = vunpack.c.l.s4 %v189_v1  ;;  %v43_v7 = vld [vmem:[#allocation5] sm:$0xff]  ;;  %v44_v8 = vld [vmem:[#allocation5 + $0x8] sm:$0xff]  ;;  %vm104_vm0 = vcmask 1041408   ;;  %vm130_vm2 = vcmask 1024  }
  0x1a   :  { %v67_v4 = vshrl.u32 %v66_v0, 7  ;;  %v45_v9 = vsub.f32 %v41_v5, %v43_v7  ;;  %v46_v11 = vsub.f32 %v42_v6, %v44_v8 }
  0x1b   :  { %v65_v3 = vunpack.c.0.s8 %v64_v2 }
  0x1c   :  { %v49_v12 = vmul.f32 %v45_v9, %v45_v9  ;;  %v50_v13 = vmul.f32 %v46_v11, %v46_v11 }
  0x1d   :  { %v68_v10 = vsub.s32 %v65_v3, %v67_v4 }
  0x1e   :  { %v62_v14 = vcombine.high %v49_v12, %v49_v12  ;;  %v79_v16 = vcombine.high %v50_v13, %v50_v13 }
  0x1f   :  { %v69_v15 = vrot.slane %v49_v12, %v68_v10  ;;  %v86_v19 = vrot.slane %v50_v13, %v68_v10 }
  0x20   :  { %v76_v17 = vrot.slane %v62_v14, %v68_v10  ;;  %v93_v25 = vrot.slane %v79_v16, %v68_v10 }
  0x21   :  { %v77_v18 = vcombine.high %v69_v15, %v69_v15  ;;  %v105_v20 = vsel %vm104_vm0, %v69_v15, 0.0  ;;  %v94_v26 = vcombine.high %v86_v19, %v86_v19  ;;  %v112_v29 = vsel %vm104_vm0, %v86_v19, 0.0 }
  0x22   :  { %v78_v21 = vcombine.high %v76_v17, %v76_v17  ;;  %v108_v23 = vsel %vm104_vm0, %v76_v17, 0.0  ;;  %v95_v31 = vcombine.high %v93_v25, %v93_v25  ;;  %v116_v34 = vsel %vm104_vm0, %v93_v25, 0.0 }
  0x23   :  { %v106_v22 = vsel %vm104_vm0, %v77_v18, 0.0  ;;  %v114_v32 = vsel %vm104_vm0, %v94_v26, 0.0 }
  0x24   :  { %v107_v24 = vadd.f32 %v106_v22, %v105_v20  ;;  %v110_v27 = vsel %vm104_vm0, %v78_v21, 0.0  ;;  %v118_v36 = vsel %vm104_vm0, %v95_v31, 0.0 }
  0x26   :  { %v109_v28 = vadd.f32 %v108_v23, %v107_v24 }
  0x28   :  { %v111_v30 = vadd.f32 %v110_v27, %v109_v28 }
  0x2a   :  { %v113_v33 = vadd.f32 %v112_v29, %v111_v30 }
  0x2c   :  { %v115_v35 = vadd.f32 %v114_v32, %v113_v33 }
  0x2e   :  { %v117_v37 = vadd.f32 %v116_v34, %v115_v35 }
  0x30   :  { %v119_v38 = vadd.f32 %v118_v36, %v117_v37 }
  0x32   :  { %120 = vadd.xlane.f32.xlu0 %v119_v38 }
  0xbb   :  { %v121_v39 = vpop.xlane.xlu0 %120 }
  0xbc   :  { %v122_v40 = vadd.f32 1e-06, %v121_v39 }
  0xbe   :  { %141 = vrsqrt.f32 %v122_v40  ;;  %vm125_vm1 = vcmp.eq.f32.partialorder %v122_v40, inf  ;;  %v128_v43 = vand.u32 2147483648, %v122_v40  ;;  %vm127_vm3 = vcmp.eq.f32.partialorder %v122_v40, 0.0 }
  0xcb   :  { %v142_v41 = vpop.eup %141 }
  0xcc   :  { %v124_v42 = vmul.f32 %v142_v41, %v122_v40 }
  0xce   :  { %v126_v44 = vsel %vm125_vm1, %v122_v40, %v124_v42 }
  0xcf   :  { %v129_v45 = vsel %vm127_vm3, %v128_v43, %v126_v44 }
  0xd0   :  { %131 = vst.msk [vmem:[%s224_s2] sm:$0x3] %vm130_vm2, %v129_v45 }
  0xd1   :  { %136 = vsyncpa [#allocation4], 1 }
  0xd2   :  { %137 = vsyncpa [#allocation6], 1 }

</bundles_post_ra>
